<compile_context>
chip_gen: v5e
topology: v5e:2x2
jax: 0.10.0
libtpu: 0.0.40
codegen_flags: <defaults>
</compile_context>

<pallas_src>
import functools
import math

import jax
import jax.numpy as jnp
from jax import lax
from jax.experimental import pallas as pl
from jax.experimental.pallas import tpu as pltpu

_W = 10.0
_E = 2.0
_C = _W * (1.0 - math.log(1.0 + _W / _E))

_LANES = 128
_CHUNK_ROWS = 256       # 256*128*4 B = 128 KiB per f32 chunk temporary
_MIN_TILE_ROWS = 512    # don't split small inputs across many grid steps
_MAX_TILE_ROWS = 4096   # 2 MiB (f32) per input per pipeline buffer


def _cdiv(a, b):
    return -(-a // b)


def _round_up(x, m):
    return _cdiv(x, m) * m


def _wing_elementwise(yp, yt):
    # Difference/abs in the input dtype (packed bf16 on v6e/v7x), then upcast
    # to f32 for the transcendental / select / accumulation.
    ax = jnp.abs(yt - yp).astype(jnp.float32)
    # TODO(synk): jnp.log1p(ax * (1/e)) would be marginally more precise for
    # tiny |x|; kept as log(1 + .) to exactly mirror the PyTorch formula.
    return jnp.where(ax < _W, _W * jnp.log(1.0 + ax * (1.0 / _E)), ax - _C)


def _wing_sum_kernel(yp_ref, yt_ref, out_ref, *, tile_rows, chunk_rows,
                     valid_rows, needs_mask):
    """Reduce one (tile_rows, 128) tile to an (8, 128) f32 partial sum."""
    n_chunks = tile_rows // chunk_rows

    if needs_mask:
        row0 = pl.program_id(0) * tile_rows
        row_iota = lax.broadcasted_iota(jnp.int32, (chunk_rows, _LANES), 0)

    def body(c, acc):
        r = pl.multiple_of(c * chunk_rows, 8)
        yp = yp_ref[pl.ds(r, chunk_rows), :]
        yt = yt_ref[pl.ds(r, chunk_rows), :]
        loss = _wing_elementwise(yp, yt)
        if needs_mask:
            # Rows beyond the real slab are OOB reads (garbage) -> zero them.
            mask = (row0 + r + row_iota) < valid_rows
            loss = jnp.where(mask, loss, 0.0)
        return acc + jnp.sum(loss.reshape(chunk_rows // 8, 8, _LANES), axis=0)

    acc0 = jnp.zeros((8, _LANES), jnp.float32)
    acc = lax.fori_loop(0, n_chunks, body, acc0, unroll=min(4, n_chunks))
    out_ref[...] = acc


def _wing_none_kernel(yp_ref, yt_ref, out_ref, *, tile_rows, chunk_rows):
    """Elementwise wing loss, streamed chunk-by-chunk (OOB writes dropped)."""
    n_chunks = tile_rows // chunk_rows

    def body(c, carry):
        r = pl.multiple_of(c * chunk_rows, 8)
        loss = _wing_elementwise(yp_ref[pl.ds(r, chunk_rows), :],
                                 yt_ref[pl.ds(r, chunk_rows), :])
        out_ref[pl.ds(r, chunk_rows), :] = loss.astype(out_ref.dtype)
        return carry

    lax.fori_loop(0, n_chunks, body, 0, unroll=min(4, n_chunks))


def _choose_tiling(n_rows):
    if n_rows <= _MIN_TILE_ROWS:
        tile_rows = _round_up(n_rows, 8)
        chunk_rows = tile_rows            # single chunk per (small) tile
    else:
        # Aim for >= 4 grid tiles (v7x megacore sharding) while keeping each
        # tile in [_MIN_TILE_ROWS, _MAX_TILE_ROWS]; keep it chunk-aligned.
        target = _round_up(_cdiv(n_rows, 4), _CHUNK_ROWS)
        tile_rows = max(_MIN_TILE_ROWS, min(_MAX_TILE_ROWS, target))
        chunk_rows = _CHUNK_ROWS
    return tile_rows, chunk_rows


def wing_loss(y_pred, y_true, reduction="mean"):
    """Pallas implementation of WingLoss.forward (reductions: mean/sum/none)."""
    assert reduction in ("mean", "sum", "none")
    orig_shape = y_pred.shape
    orig_dtype = y_pred.dtype

    flat_p = y_pred.reshape(-1)
    flat_t = y_true.reshape(-1)
    n = flat_p.shape[0]

    n_rows = _cdiv(n, _LANES)
    padded = (n_rows * _LANES != n)
    if padded:
        # We have to copy for a lane-dense slab anyway, so also round rows to
        # a sublane multiple (same single pad op, no extra HBM traffic).
        n_rows = _round_up(n_rows, 8)
        pad = n_rows * _LANES - n
        flat_p = jnp.pad(flat_p, (0, pad))
        flat_t = jnp.pad(flat_t, (0, pad))
    yp2 = flat_p.reshape(n_rows, _LANES)
    yt2 = flat_t.reshape(n_rows, _LANES)

    tile_rows, chunk_rows = _choose_tiling(n_rows)
    num_tiles = _cdiv(n_rows, tile_rows)
    needs_mask = num_tiles * tile_rows > n_rows   # ragged last tile

    in_specs = [
        pl.BlockSpec((tile_rows, _LANES), lambda i: (i, 0)),
        pl.BlockSpec((tile_rows, _LANES), lambda i: (i, 0)),
    ]
    params = pltpu.CompilerParams(dimension_semantics=("parallel",))
    itemsize = jnp.dtype(orig_dtype).itemsize

    if reduction == "none":
        out = pl.pallas_call(
            functools.partial(_wing_none_kernel,
                              tile_rows=tile_rows, chunk_rows=chunk_rows),
            out_shape=jax.ShapeDtypeStruct((n_rows, _LANES), orig_dtype),
            grid=(num_tiles,),
            in_specs=in_specs,
            out_specs=pl.BlockSpec((tile_rows, _LANES), lambda i: (i, 0)),
            compiler_params=params,
            cost_estimate=pl.CostEstimate(flops=10 * n, transcendentals=n,
                                          bytes_accessed=3 * n * itemsize),
        )(yp2, yt2)
        if padded:
            return out.reshape(-1)[:n].reshape(orig_shape)
        return out.reshape(orig_shape)   # contiguous -> free

    partials = pl.pallas_call(
        functools.partial(_wing_sum_kernel,
                          tile_rows=tile_rows, chunk_rows=chunk_rows,
                          valid_rows=n_rows, needs_mask=needs_mask),
        out_shape=jax.ShapeDtypeStruct((num_tiles * 8, _LANES), jnp.float32),
        grid=(num_tiles,),
        in_specs=in_specs,
        out_specs=pl.BlockSpec((8, _LANES), lambda i: (i, 0)),
        compiler_params=params,
        cost_estimate=pl.CostEstimate(flops=10 * n, transcendentals=n,
                                      bytes_accessed=2 * n * itemsize),
    )(yp2, yt2)

    total = jnp.sum(partials)   # tiny reduce over per-tile (8,128) partials
    if reduction == "mean":
        return total / n
    return total


def _reference(y_pred, y_true, reduction="mean"):
    x = y_true.astype(jnp.float32) - y_pred.astype(jnp.float32)
    ax = jnp.abs(x)
    losses = jnp.where(ax < _W, _W * jnp.log(1.0 + ax / _E), ax - _C)
    if reduction == "mean":
        return jnp.mean(losses)
    if reduction == "sum":
        return jnp.sum(losses)
    return losses


if __name__ == "__main__":
    key = jax.random.PRNGKey(0)

    def make_case(k, shape):
        k1, k2 = jax.random.split(k)
        y_pred = jax.random.normal(k1, shape, dtype=jnp.float32)
        # diffs span both branches of the piecewise wing loss (|x| < w, >= w)
        diff = jax.random.uniform(k2, shape, dtype=jnp.float32,
                                  minval=-15.0, maxval=15.0)
        return y_pred, y_pred + diff

    cases = {
        # batch of 8 predictions, 17 landmarks x 2 coords: pad path, 1 tile.
        "small": make_case(jax.random.fold_in(key, 0), (8, 34)),
        # no-pad fast path, multi-tile grid, multi-chunk loop, ragged last
        # tile (520 rows -> 2 tiles of 512 -> in-kernel row mask).
        "tiled": make_case(jax.random.fold_in(key, 1), (130, 512)),
    }

    for name, (y_pred, y_true) in cases.items():
        out_mean = jax.block_until_ready(wing_loss(y_pred, y_true, "mean"))
        out_sum = jax.block_until_ready(wing_loss(y_pred, y_true, "sum"))
        out_none = jax.block_until_ready(wing_loss(y_pred, y_true, "none"))

        ref_mean = _reference(y_pred, y_true, "mean")
        ref_sum = _reference(y_pred, y_true, "sum")
        ref_none = _reference(y_pred, y_true, "none")

        assert out_none.shape == y_pred.shape and out_none.dtype == y_pred.dtype
        assert jnp.allclose(out_mean, ref_mean, rtol=1e-4, atol=1e-4), (
            name, out_mean, ref_mean)
        assert jnp.allclose(out_sum, ref_sum, rtol=1e-4, atol=1e-2), (
            name, out_sum, ref_sum)
        assert jnp.allclose(out_none, ref_none, rtol=1e-5, atol=1e-5), name

    print("KERNEL_OK")
</pallas_src>

<mosaic_0001>
module attributes {stable_mosaic.version = 11 : i64} {
  func.func @_wing_sum_kernel(%arg0: i32, %arg1: memref<8x128xf32, #tpu.memory_space<vmem>>, %arg2: memref<8x128xf32, #tpu.memory_space<vmem>>, %arg3: memref<8x128xf32, #tpu.memory_space<vmem>>) attributes {dimension_semantics = [#tpu.dimension_semantics<parallel>], iteration_bounds = array<i64: 1>, scalar_prefetch = 0 : i64, scratch_operands = 0 : i64, tpu.core_type = #tpu.core_type<tc>, window_params = [{transform_indices = @transform_0, window_bounds = array<i64: 8, 128>}, {transform_indices = @transform_1, window_bounds = array<i64: 8, 128>}, {transform_indices = @transform_2, window_bounds = array<i64: 8, 128>}]} {
    %cst = arith.constant 0.000000e+00 : f32
    %0 = vector.broadcast %cst : f32 to vector<8x128xf32>
    %c0_i32 = arith.constant 0 : i32
    %c8_i32 = arith.constant 8 : i32
    %1 = arith.muli %c0_i32, %c8_i32 : i32
    %2 = tpu.assume_multiple %1, 8 : i32
    %3 = arith.index_cast %2 : i32 to index
    %c0 = arith.constant 0 : index
    %4 = vector.load %arg1[%3, %c0] : memref<8x128xf32, #tpu.memory_space<vmem>>, vector<8x128xf32>
    %5 = arith.index_cast %2 : i32 to index
    %c0_0 = arith.constant 0 : index
    %6 = vector.load %arg2[%5, %c0_0] : memref<8x128xf32, #tpu.memory_space<vmem>>, vector<8x128xf32>
    %7 = arith.subf %6, %4 : vector<8x128xf32>
    %8 = math.absf %7 : vector<8x128xf32>
    %cst_1 = arith.constant 1.000000e+01 : f32
    %9 = vector.broadcast %cst_1 : f32 to vector<8x128xf32>
    %10 = arith.cmpf olt, %8, %9 : vector<8x128xf32>
    %cst_2 = arith.constant 5.000000e-01 : f32
    %11 = vector.broadcast %cst_2 : f32 to vector<8x128xf32>
    %12 = arith.mulf %8, %11 : vector<8x128xf32>
    %cst_3 = arith.constant 1.000000e+00 : f32
    %13 = vector.broadcast %cst_3 : f32 to vector<8x128xf32>
    %14 = arith.addf %13, %12 : vector<8x128xf32>
    %15 = math.log %14 : vector<8x128xf32>
    %cst_4 = arith.constant 1.000000e+01 : f32
    %16 = vector.broadcast %cst_4 : f32 to vector<8x128xf32>
    %17 = arith.mulf %16, %15 : vector<8x128xf32>
    %cst_5 = arith.constant -7.9175949 : f32
    %18 = vector.broadcast %cst_5 : f32 to vector<8x128xf32>
    %19 = arith.subf %8, %18 : vector<8x128xf32>
    %20 = arith.select %10, %17, %19 : vector<8x128xi1>, vector<8x128xf32>
    %21 = vector.shape_cast %20 : vector<8x128xf32> to vector<1x8x128xf32>
    %cst_6 = arith.constant dense<0.000000e+00> : vector<8x128xf32>
    %22 = vector.multi_reduction <add>, %21, %cst_6 [0] : vector<1x8x128xf32> to vector<8x128xf32>
    %23 = arith.addf %0, %22 : vector<8x128xf32>
    %c1_i32 = arith.constant 1 : i32
    %c0_7 = arith.constant 0 : index
    %c0_8 = arith.constant 0 : index
    %24 = vector.load %arg3[%c0_7, %c0_8] : memref<8x128xf32, #tpu.memory_space<vmem>>, vector<8x128xf32>
    tpu.vector_store %arg3[%c0_7, %c0_8], %23 {strides = array<i32>} : memref<8x128xf32, #tpu.memory_space<vmem>>, vector<8x128xf32>,
    return
  }
  func.func @transform_0(%arg0: i32) -> (i32, i32) {
    %c0_i32 = arith.constant 0 : i32
    %c0_i32_0 = arith.constant 0 : i32
    return %arg0, %c0_i32 : i32, i32
  }
  func.func @transform_1(%arg0: i32) -> (i32, i32) {
    %c0_i32 = arith.constant 0 : i32
    %c0_i32_0 = arith.constant 0 : i32
    return %arg0, %c0_i32 : i32, i32
  }
  func.func @transform_2(%arg0: i32) -> (i32, i32) {
    %c0_i32 = arith.constant 0 : i32
    %c0_i32_0 = arith.constant 0 : i32
    return %arg0, %c0_i32 : i32, i32
  }
}

</mosaic_0001>

<bundles_post_ra>
// kernel: tpu_custom_call.1
= control target key start
LH: loop header
LB: loop body
LE: loop exit
PB: predicated region body
PF: predicated region fallthrough
CT: control target
= control target key end

     0   :  { %7 = vsyncpa [#allocation3], 0  ;;  %s184_s0 = inlined_call_operand.hbm [shape: f32[8,128], index: 0, kind: input, shape index: {}]   ;;  %s185_s1 = inlined_call_operand.hbm [shape: f32[8,128], index: 1, kind: input, shape index: {}]   ;;  %s186_s2 = inlined_call_operand.hbm [shape: f32[8,128], index: 2, kind: output, shape index: {}]  }
   0x1   :  { %8 = vsyncpa [#allocation6], 0 }
   0x2   :  { %9 = vsyncpa [#allocation4], 0  ;;  %s15_s11 = sshll.u32 %s184_s0, 4  ;;  %s157_s12 = smov [#allocation2]   ;;  %s16_s11 = int_to_ptr.hbm [resolvable:$true] %s15_s11 }
   0x3   :  { %s17_s13 = sshll.u32 %s157_s12, 4  ;;  %s26_s16 = sshll.u32 %s185_s1, 4  ;;  %s18_s13 = int_to_ptr.vmem [resolvable:$true] %s17_s13  ;;  %s27_s16 = int_to_ptr.hbm [resolvable:$true] %s26_s16 }
   0x4   :  { %20 = dma.hbm_to_vmem [thread:$0]  %s16_s11, 128, %s18_s13, [#allocation3]  }
   0x5   :  { %s158_s17 = smov [#allocation5]  }
   0x6   :  { %s28_s18 = sshll.u32 %s158_s17, 4  ;;  %s29_s18 = int_to_ptr.vmem [resolvable:$true] %s28_s18 }
   0x7   :  { %31 = dma.hbm_to_vmem [thread:$0]  %s27_s16, 128, %s29_s18, [#allocation6]  }
   0x8   :  { %151 = dma.done.wait [#allocation3], 128  }
   0x9   :  { %152 = vsyncadd [#allocation3], 4294967168 }
   0xa   :  { %153 = dma.done.wait [#allocation6], 128  }
   0xb   :  { %154 = vsyncadd [#allocation6], 4294967168  ;;  %v40_v0 = vld [vmem:[#allocation2] sm:$0xff]  ;;  %v41_v1 = vld [vmem:[#allocation5] sm:$0xff]  ;;  %s159_s0 = smov [#allocation7]   ;;  %s62_s21 = sshll.u32 %s186_s2, 4  ;;  %s63_s21 = int_to_ptr.hbm [resolvable:$true] %s62_s21 }
   0xc   :  { %v42_v2 = vsub.f32 %v41_v1, %v40_v0  ;;  %s60_s1 = sshll.u32 %s159_s0, 4  ;;  %s61_s1 = int_to_ptr.vmem [resolvable:$true] %s60_s1 }
   0xe   :  { %v43_v3 = vand.u32 2147483647, %v42_v2 }
  0x10   :  { %v45_v4 = vmul.f32 0.5, %v43_v3  ;;  %v73_v8 = vadd.f32 7.917595, %v43_v3  ;;  %vm44_vm0 = vcmp.lt.f32.partialorder %v43_v3, 10.0 }
  0x12   :  { %v46_v5 = vadd.f32 1.0, %v45_v4 }
  0x14   :  { %77 = vlog2.f32 %v46_v5 }
  0x1a   :  { %v78_v6 = vpop.eup %77 }
  0x1b   :  { %v48_v7 = vmul.f32 0.6931472, %v78_v6 }
  0x1d   :  { %v49_v9 = vmul.f32 10.0, %v48_v7 }
  0x1f   :  { %v51_v10 = vsel %vm44_vm0, %v49_v9, %v73_v8 }
  0x20   :  { %54 = vst [vmem:[#allocation7] sm:$0xff] %v51_v10 }
  0x21   :  { %65 = dma.vmem_to_hbm [thread:$0]  %s61_s1, 128, %s63_s21, [#allocation4]  }
  0x22   :  { %155 = dma.done.wait [#allocation4], 128  }
  0x23   :  { %156 = vsyncadd [#allocation4], 4294967168 }
  0x24   :  { %70 = vsyncpa [#allocation3], 1 }
  0x25   :  { %71 = vsyncpa [#allocation6], 1 }
  0x26   :  { %72 = vsyncpa [#allocation4], 1 }

</bundles_post_ra>
